<compile_context>
chip_gen: v5e
topology: v5e:2x2
jax: 0.10.0
libtpu: 0.0.40
codegen_flags: <defaults>
</compile_context>

<pallas_src>
from functools import partial

import jax
import jax.numpy as jnp
from jax import lax
from jax.experimental import pallas as pl
from jax.experimental.pallas import tpu as pltpu


def _round_up(x, m):
    return (x + m - 1) // m * m


def _round_down(x, m):
    return (x // m) * m


def _fold_factor(s, f, max_lanes=512):
    """Best fold factor k (divisor of s) for (B,S,F) -> (B,S/k,k*F) lane packing."""
    if f >= 128:
        return 1
    best_k = 1
    best_score = (f / _round_up(f, 128), f)          # (lane density, lane width)
    kmax = min(s, max(1, max_lanes // f))
    for k in range(2, kmax + 1):
        if s % k:
            continue
        kf = k * f
        score = (kf / _round_up(kf, 128), kf)
        if score > best_score:
            best_k, best_score = k, score
    return best_k


def _choose_tiles(b, s2, f2, itemsize, budget_bytes):
    """Pick (batch tile, seq tile, sublane granularity) for the folded array."""
    f2_pad = _round_up(f2, 128)
    sub = max(8, 32 // itemsize)                     # f32 -> 8, bf16 -> 16, int8 -> 32
    row_bytes = f2_pad * itemsize
    max_rows = max(8 * sub, budget_bytes // row_bytes)

    if 8 * s2 <= max_rows:
        ts = s2                                       # whole seq depth in one block
    else:
        ts = max(sub, _round_down(max_rows // 8, sub))
        if ts >= s2:
            ts = s2

    if b <= 8:
        tb = b                                        # full (small) batch in one tile
    else:
        tb = max(8, _round_down(max_rows // max(ts, 1), 8))
        tb = min(tb, _round_up(b, 8))
        if -(-b // tb) < 2:                           # >= 2 batch tiles (v7x megacore)
            tb = max(8, _round_up(-(-b // 2), 8))
    return tb, ts, sub


def _colsum_kernel(pert_ref, out_ref, *, ts, s_valid, nsb, cb, cs, masked_tail):
    """out[b, j] += sum_s |pert[b, s, j]|, accumulated across the seq grid axis."""
    si = pl.program_id(1)

    @pl.when(si == 0)
    def _init():
        out_ref[...] = jnp.zeros_like(out_ref)

    tb = out_ref.shape[0]

    def accumulate(apply_mask):
        # Slabbed so the f32 temp of |x| stays small even for large blocks.
        for b0 in range(0, tb, cb):
            nb = min(cb, tb - b0)
            for s0 in range(0, ts, cs):
                ns = min(cs, ts - s0)
                x = pert_ref[pl.ds(b0, nb), pl.ds(s0, ns), :]
                a = jnp.abs(x).astype(jnp.float32)    # abs in native dtype, f32 accumulate
                if apply_mask:
                    row = si * ts + s0 + lax.broadcasted_iota(jnp.int32, (1, ns, 1), 1)
                    a = jnp.where(row < s_valid, a, 0.0)
                out_ref[pl.ds(b0, nb), :] += jnp.sum(a, axis=1)

    if not masked_tail:
        accumulate(False)
    else:
        @pl.when(si < nsb - 1)
        def _full_blocks():
            accumulate(False)

        @pl.when(si == nsb - 1)
        def _tail_block():
            accumulate(True)


def _column_abs_sums(pert, vmem_budget_bytes=8 * 1024 * 1024):
    """Pallas-computed per-sample column sums: (B, S, F) -> (B, F) float32."""
    b, s, f = pert.shape
    itemsize = jnp.dtype(pert.dtype).itemsize

    # Fold seq rows into the lane axis when F is lane-sparse (zero-copy reshape).
    k = _fold_factor(s, f)
    s2, f2 = s // k, k * f
    folded = pert.reshape(b, s2, f2) if k > 1 else pert

    f2_pad = _round_up(f2, 128)
    tb, ts, sub = _choose_tiles(b, s2, f2, itemsize, vmem_budget_bytes)

    # Slab sizes: bound the in-kernel f32 temp to roughly <= 1 MiB per slab.
    slab_rows = max(sub, (1 << 20) // (f2_pad * 4))
    cb_floor = tb if tb < 8 else 8
    cs = min(ts, max(sub, _round_down(max(slab_rows // cb_floor, sub), sub)))
    if tb < 8:
        cb = tb
    else:
        cb = min(tb, max(8, _round_down(max(slab_rows // max(cs, 1), 8), 8)))

    grid = (pl.cdiv(b, tb), pl.cdiv(s2, ts))
    masked_tail = (s2 % ts) != 0

    in_block_bytes = tb * ts * f2_pad * itemsize
    out_block_bytes = tb * f2_pad * 4
    slab_bytes = cb * cs * f2_pad * 4
    vmem_limit = min(max(2 * in_block_bytes + 2 * out_block_bytes + 2 * slab_bytes
                         + (2 << 20), 32 << 20), 64 << 20)

    kernel = partial(_colsum_kernel, ts=ts, s_valid=s2, nsb=grid[1],
                     cb=cb, cs=cs, masked_tail=masked_tail)

    cost = pl.CostEstimate(
        flops=int(2 * b * s * f),
        transcendentals=0,
        bytes_accessed=int(b * s * f * itemsize + b * f2 * 4),
    )

    col = pl.pallas_call(
        kernel,
        out_shape=jax.ShapeDtypeStruct((b, f2), jnp.float32),
        grid=grid,
        in_specs=[pl.BlockSpec((tb, ts, f2), lambda bi, si: (bi, si, 0))],
        out_specs=pl.BlockSpec((tb, f2), lambda bi, si: (bi, 0)),
        compiler_params=pltpu.CompilerParams(
            dimension_semantics=("parallel", "arbitrary"),
            vmem_limit_bytes=int(vmem_limit)),
        cost_estimate=cost,
    )(folded)

    if k > 1:
        col = col.reshape(b, k, f).sum(axis=1)        # undo the lane fold (exact)
    return col


@partial(jax.jit, static_argnames=("kappa", "lambda_1", "vmem_budget_bytes"))
def adversarial_loss(logits, perturbations, original_labels, *, kappa, lambda_1,
                     vmem_budget_bytes=8 * 1024 * 1024):
    """Pallas implementation of AdversarialLoss.forward.

    Returns (mean_loss: scalar f32, sample_net_losses: (B,) f32).
    Labels are assumed binary {0, 1}, matching `(~labels.bool()).int()`.
    """
    logits = jnp.asarray(logits)
    if logits.ndim == 1:
        logits = logits[None, :]
    logits = logits.astype(jnp.float32)
    perturbations = jnp.asarray(perturbations)        # keep native dtype on the wire
    labels = jnp.asarray(original_labels).reshape(-1).astype(jnp.int32)

    # O(B) logit gather + margin in XLA (negligible work).
    b = logits.shape[0]
    idx = jnp.arange(b)
    not_labels = jnp.where(labels != 0, 0, 1)
    pred = logits[idx, labels]
    other = logits[idx, not_labels]
    logit_losses = jnp.maximum(pred - other, jnp.float32(-float(kappa)))

    # Bandwidth-heavy part in Pallas: per-sample column sums of |perturbation|.
    col_sums = _column_abs_sums(perturbations, vmem_budget_bytes)     # (B, F) f32
    l1_losses = jnp.float32(lambda_1) * jnp.max(col_sums, axis=1)     # matrix 1-norm

    sample_losses = logit_losses + l1_losses
    mean_loss = jnp.mean(sample_losses)
    return mean_loss, sample_losses


def _reference(logits, perturbations, original_labels, *, kappa, lambda_1):
    """Pure-JAX reference mirroring the PyTorch module."""
    logits = jnp.asarray(logits)
    if logits.ndim == 1:
        logits = logits[None, :]
    logits = logits.astype(jnp.float32)
    pert = jnp.asarray(perturbations).astype(jnp.float32)
    b = logits.shape[0]
    idx = jnp.arange(b)
    labels = jnp.asarray(original_labels).astype(jnp.int32)
    not_labels = jnp.where(labels != 0, 0, 1)
    logit_losses = jnp.maximum(logits[idx, labels] - logits[idx, not_labels], -kappa)
    l1 = lambda_1 * jnp.max(jnp.sum(jnp.abs(pert), axis=1), axis=1)
    sample = logit_losses + l1
    return jnp.mean(sample), sample


if __name__ == "__main__":
    key = jax.random.PRNGKey(0)
    ks = jax.random.split(key, 9)

    def check(logits, pert, labels, kappa, lambda_1, **kw):
        mean, sample = adversarial_loss(logits, pert, labels,
                                        kappa=kappa, lambda_1=lambda_1, **kw)
        jax.block_until_ready((mean, sample))
        rmean, rsample = _reference(logits, pert, labels,
                                    kappa=kappa, lambda_1=lambda_1)
        assert jnp.allclose(sample, rsample, atol=1e-4, rtol=1e-4)
        assert jnp.allclose(mean, rmean, atol=1e-4, rtol=1e-4)

    # 1) Small aligned case (B=2, S=8, F=32): lane folding (k=8), single block.
    B1, S1, F1 = 2, 8, 32
    logits1 = jax.random.normal(ks[0], (B1, 2), dtype=jnp.float32)
    pert1 = 0.1 * jax.random.normal(ks[1], (B1, S1, F1), dtype=jnp.float32)
    labels1 = jax.random.bernoulli(ks[2], 0.5, (B1,)).astype(jnp.int32)
    check(logits1, pert1, labels1, 0.0, 0.1)

    # 2) Unaligned shapes, forced multi-tile grid (f32, F>=128 so no fold):
    #    exercises in-kernel seq-tail masking and batch-tail OOB handling,
    #    with NO wrapper-side padding of the perturbation tensor.
    B2, S2, F2 = 20, 52, 144
    logits2 = jax.random.normal(ks[3], (B2, 2), dtype=jnp.float32)
    pert2 = 0.05 * jax.random.normal(ks[4], (B2, S2, F2), dtype=jnp.float32)
    labels2 = jax.random.bernoulli(ks[5], 0.5, (B2,)).astype(jnp.int32)
    check(logits2, pert2, labels2, 0.5, 0.2, vmem_budget_bytes=64 * 1024)

    # 3) Same shapes, native bf16 on the wire (16-row sublane tiling + masked tail).
    check(logits2, pert2.astype(jnp.bfloat16), labels2, 0.5, 0.2,
          vmem_budget_bytes=64 * 1024)

    # 4) Small-F bf16 with lane folding (F=19 -> 456 dense lanes) + ragged batch.
    B3, S3, F3 = 20, 48, 19
    logits3 = jax.random.normal(ks[6], (B3, 2), dtype=jnp.float32)
    pert3 = (0.05 * jax.random.normal(ks[7], (B3, S3, F3), dtype=jnp.float32)
             ).astype(jnp.bfloat16)
    labels3 = jax.random.bernoulli(ks[8], 0.5, (B3,)).astype(jnp.int32)
    check(logits3, pert3, labels3, 0.25, 0.3, vmem_budget_bytes=64 * 1024)

    print("KERNEL_OK")
</pallas_src>

<mosaic_0001>
module attributes {stable_mosaic.version = 11 : i64} {
  func.func @_colsum_kernel(%arg0: i32, %arg1: i32, %arg2: memref<2x1x256xf32, #tpu.memory_space<vmem>>, %arg3: memref<2x256xf32, #tpu.memory_space<vmem>>) attributes {dimension_semantics = [#tpu.dimension_semantics<parallel>, #tpu.dimension_semantics<arbitrary>], iteration_bounds = array<i64: 1, 1>, scalar_prefetch = 0 : i64, scratch_operands = 0 : i64, tpu.core_type = #tpu.core_type<tc>, window_params = [{transform_indices = @transform_0, window_bounds = array<i64: 2, 1, 256>}, {transform_indices = @transform_1, window_bounds = array<i64: 2, 256>}]} {
    %c0_i32 = arith.constant 0 : i32
    %0 = arith.cmpi eq, %arg1, %c0_i32 : i32
    %1 = arith.extui %0 : i1 to i32
    %c0_i32_0 = arith.constant 0 : i32
    %2 = arith.cmpi ne, %1, %c0_i32_0 : i32
    scf.if %2 {
      %cst_7 = arith.constant 0.000000e+00 : f32
      %9 = vector.broadcast %cst_7 : f32 to vector<2x256xf32>
      %c0_8 = arith.constant 0 : index
      %c0_9 = arith.constant 0 : index
      %10 = vector.load %arg3[%c0_8, %c0_9] : memref<2x256xf32, #tpu.memory_space<vmem>>, vector<2x256xf32>
      tpu.vector_store %arg3[%c0_8, %c0_9], %9 {strides = array<i32>} : memref<2x256xf32, #tpu.memory_space<vmem>>, vector<2x256xf32>,
    } else {
    }
    %c0 = arith.constant 0 : index
    %c0_1 = arith.constant 0 : index
    %c0_2 = arith.constant 0 : index
    %3 = vector.load %arg2[%c0, %c0_1, %c0_2] : memref<2x1x256xf32, #tpu.memory_space<vmem>>, vector<2x1x256xf32>
    %4 = math.absf %3 : vector<2x1x256xf32>
    %c0_3 = arith.constant 0 : index
    %c0_4 = arith.constant 0 : index
    %5 = vector.load %arg3[%c0_3, %c0_4] : memref<2x256xf32, #tpu.memory_space<vmem>>, vector<2x256xf32>
    %cst = arith.constant dense<0.000000e+00> : vector<2x256xf32>
    %6 = vector.multi_reduction <add>, %4, %cst [1] : vector<2x1x256xf32> to vector<2x256xf32>
    %7 = arith.addf %5, %6 : vector<2x256xf32>
    %c0_5 = arith.constant 0 : index
    %c0_6 = arith.constant 0 : index
    %8 = vector.load %arg3[%c0_5, %c0_6] : memref<2x256xf32, #tpu.memory_space<vmem>>, vector<2x256xf32>
    tpu.vector_store %arg3[%c0_5, %c0_6], %7 {strides = array<i32>} : memref<2x256xf32, #tpu.memory_space<vmem>>, vector<2x256xf32>,
    return
  }
  func.func @transform_0(%arg0: i32, %arg1: i32) -> (i32, i32, i32) {
    %c0_i32 = arith.constant 0 : i32
    %c0_i32_0 = arith.constant 0 : i32
    return %arg0, %arg1, %c0_i32 : i32, i32, i32
  }
  func.func @transform_1(%arg0: i32, %arg1: i32) -> (i32, i32) {
    %c0_i32 = arith.constant 0 : i32
    %c0_i32_0 = arith.constant 0 : i32
    return %arg0, %c0_i32 : i32, i32
  }
}

</mosaic_0001>

<bundles_post_ra>
// kernel: adversarial_loss.1
= control target key start
LH: loop header
LB: loop body
LE: loop exit
PB: predicated region body
PF: predicated region fallthrough
CT: control target
= control target key end

     0   :  { %v34_v0 = vmov 0.0   ;;  %s60_s1 = inlined_call_operand.vmem [shape: f32[2,256], index: 1, kind: output, shape index: {}]   ;;  %s61_s0 = inlined_call_operand.vmem [shape: f32[2,1,256], index: 0, kind: input, shape index: {}]  }
   0x1   :  { %12 = vst [vmem:[%s60_s1] sm:$0xf] %v34_v0  ;;  %v13_v1 = vld [vmem:[%s61_s0] sm:$0x3]  ;;  %v14_v2 = vld [vmem:[%s61_s0 + $0x2] sm:$0x3] }
   0x2   :  { %v15_v3 = vand.u32 2147483647, %v13_v1  ;;  %v16_v4 = vand.u32 2147483647, %v14_v2 }
   0x4   :  { %22 = vst [vmem:[#allocation1] ss:$2 sm:$0xff] %v15_v3 }
   0x5   :  { %24 = vst [vmem:[#allocation1 + $0x1] ss:$2 sm:$0xff] %v16_v4 }
   0x8   :  { %v17_v5 = vld [vmem:[%s60_s1] sm:$0xf] }
   0xc   :  { %v25_v6 = vld [vmem:[#allocation1] sm:$0xff] }
   0xd   :  { %v27_v7 = vadd.f32 %v25_v6, %v17_v5 }
   0xf   :  { %28 = vst [vmem:[%s60_s1] sm:$0xf] %v27_v7 }

</bundles_post_ra>
